<compile_context>
chip_gen: v7x
topology: tpu7x:2x2x1
jax: 0.10.0
libtpu: 0.0.40
codegen_flags: <defaults>
</compile_context>

<pallas_src>
import functools

import jax
import jax.numpy as jnp
from jax import lax
from jax.experimental import pallas as pl
from jax.experimental.pallas import tpu as pltpu

LANE = 128
SUB = 8


def _round_up(x, m):
    return (x + m - 1) // m * m


def _vmem_capacity_bytes():
    try:
        info = pltpu.get_tpu_info()
        cap = getattr(info, "vmem_capacity_bytes", None)
        if cap:
            return int(cap)
    except Exception:
        pass
    return 64 * 2**20  # conservative (v7x per-core VMEM)


def _unroll_factor(n, cap=8):
    if n <= cap:
        return max(n, 1)
    for d in (cap, 4, 2):
        if n % d == 0:
            return d
    return 1


def _largest_divisor_leq(n, cap):
    cap = max(1, min(n, cap))
    for d in range(cap, 0, -1):
        if n % d == 0:
            return d
    return 1


# ----------------------------- Pallas kernel --------------------------------

def _spectral_mul_kernel(ar_ref, ai_ref, wr_ref, wi_ref, or_ref, oi_ref, *, ci_unroll):
    # ar/ai : (Ci, Bb, TR, 128)   activations (real / imag), channel-major
    # wr/wi : (Ci, Co, TR, 128)   weights (real / imag)
    # out   : (Co, Bb, TR, 128)
    #
    # out[o,b,...] = sum_i a[i,b,...] * w[i,o,...]   (complex, 4-multiply MAC)
    Ci, Bb, TR, L = ar_ref.shape
    Co = wr_ref.shape[1]

    @pl.loop(0, Co)
    def _(o):
        def i_body(i, carry):
            acc_r, acc_i = carry
            ar = ar_ref[i]            # (Bb, TR, 128)
            ai = ai_ref[i]            # (Bb, TR, 128)
            wr = wr_ref[i, o]         # (TR, 128), broadcasts over Bb
            wi = wi_ref[i, o]
            acc_r = acc_r + (ar * wr - ai * wi)
            acc_i = acc_i + (ar * wi + ai * wr)
            return acc_r, acc_i

        zeros = jnp.zeros((Bb, TR, L), jnp.float32)
        acc_r, acc_i = lax.fori_loop(0, Ci, i_body, (zeros, zeros),
                                     unroll=ci_unroll)
        or_ref[o] = acc_r
        oi_ref[o] = acc_i


def spectral_mul_pallas(a_r, a_i, w_r, w_i):
    """Fused complex einsum('bixy,ioxy->boxy') over the full (2*m1, m2) spectrum.

    a_r/a_i : (Ci, B, K, L) float32 (channel-major)
    w_r/w_i : (Ci, Co, K, L) float32
    returns (out_r, out_i) : (Co, B, K, L) float32 (channel-major)
    """
    Ci, B, K, L = a_r.shape
    Co = w_r.shape[1]
    S = K * L

    # ---- generation-aware tile selection (TR rows of 128 lanes per step) ----
    r_needed = -(-S // LANE)
    r8 = _round_up(r_needed, SUB)

    vmem_cap = _vmem_capacity_bytes()
    vmem_limit = int(min(vmem_cap * 3 // 4, 100 * 2**20))
    budget = int(vmem_limit * 0.8)
    # double-buffered, real+imag, f32, per row of 128 lanes
    per_row = 2 * 2 * 4 * LANE * (Ci * B + Ci * Co + Co * B)
    tr_vmem = max(SUB, (budget // per_row) // SUB * SUB)
    TR = max(SUB, min(tr_vmem, r8, 32))

    R = _round_up(r8, TR)          # pad up to the tile, never shrink the tile
    Sp = R * LANE
    s_steps = R // TR

    # Batch block: keep whole batch in one block unless the spectral grid
    # collapses to one step (then split B so >=2 parallel steps exist for the
    # second TensorCore on v7x). Also cap Bb*TR for accumulator vreg pressure.
    Bb = _largest_divisor_leq(B, max(1, 128 // TR))
    if s_steps == 1 and Bb == B and B > 1:
        Bb = _largest_divisor_leq(B, max(1, B // 2))
    b_steps = B // Bb

    def prep_a(a):                 # (Ci,B,K,L) -> (Ci,B,R,128), no transpose
        a = a.reshape(Ci, B, S)
        if Sp != S:
            a = jnp.pad(a, ((0, 0), (0, 0), (0, Sp - S)))
        return a.reshape(Ci, B, R, LANE)

    def prep_w(w):                 # (Ci,Co,K,L) -> (Ci,Co,R,128)
        w = w.reshape(Ci, Co, S)
        if Sp != S:
            w = jnp.pad(w, ((0, 0), (0, 0), (0, Sp - S)))
        return w.reshape(Ci, Co, R, LANE)

    # grid = (spectral tiles, batch tiles); batch is the FAST axis so the
    # weight blocks (index_map independent of b) are not re-fetched per batch.
    a_spec = pl.BlockSpec((Ci, Bb, TR, LANE), lambda s, b: (0, b, s, 0))
    w_spec = pl.BlockSpec((Ci, Co, TR, LANE), lambda s, b: (0, 0, s, 0))
    o_spec = pl.BlockSpec((Co, Bb, TR, LANE), lambda s, b: (0, b, s, 0))

    kernel = functools.partial(_spectral_mul_kernel, ci_unroll=_unroll_factor(Ci))

    out_r, out_i = pl.pallas_call(
        kernel,
        out_shape=(jax.ShapeDtypeStruct((Co, B, R, LANE), jnp.float32),
                   jax.ShapeDtypeStruct((Co, B, R, LANE), jnp.float32)),
        grid=(s_steps, b_steps),
        in_specs=[a_spec, a_spec, w_spec, w_spec],
        out_specs=(o_spec, o_spec),
        compiler_params=pltpu.CompilerParams(
            dimension_semantics=("parallel", "parallel"),
            vmem_limit_bytes=vmem_limit),
    )(prep_a(a_r), prep_a(a_i), prep_w(w_r), prep_w(w_i))

    out_r = out_r.reshape(Co, B, Sp)[:, :, :S].reshape(Co, B, K, L)
    out_i = out_i.reshape(Co, B, Sp)[:, :, :S].reshape(Co, B, K, L)
    return out_r, out_i


# ------------------------- transformer (plain-JAX glue) ---------------------

class VandermondeTransform2D:
    # TODO(synk): the reference module receives an externally-constructed
    # `transformer` (possibly on a nonuniform sparse_x grid); here we build the
    # standard uniform-grid VNO Vandermonde (DFT) transform deterministically
    # in-script, in split real/imag form with stacked factors (2 matmuls per
    # stage instead of 4-6).
    def __init__(self, nx, ny, modes1, modes2):
        jx = jnp.arange(nx, dtype=jnp.float32)
        jy = jnp.arange(ny, dtype=jnp.float32)
        kx = jnp.concatenate([jnp.arange(modes1, dtype=jnp.float32),
                              jnp.arange(nx - modes1, nx, dtype=jnp.float32)])
        ky = jnp.arange(modes2, dtype=jnp.float32)
        ang_x = -2.0 * jnp.pi * kx[:, None] * jx[None, :] / nx
        ang_y = -2.0 * jnp.pi * ky[:, None] * jy[None, :] / ny
        self.VxR, self.VxI = jnp.cos(ang_x), jnp.sin(ang_x)   # (K, nx), K = 2*m1
        self.VyR, self.VyI = jnp.cos(ang_y), jnp.sin(ang_y)   # (L, ny), L = m2
        self.K, self.L = 2 * modes1, modes2
        self.nx, self.ny = nx, ny
        # stacked factors -> fewer, fatter MXU matmuls
        self.Vx_fwd = jnp.concatenate([self.VxR, self.VxI], axis=0)    # (2K, nx)
        self.Vy_stack = jnp.concatenate([self.VyR, self.VyI], axis=0)  # (2L, ny)
        self.Vx_inv = jnp.concatenate([self.VxR, self.VxI], axis=1)    # (K, 2nx)

    def forward(self, x):
        # x: (B, C, nx, ny) real -> channel-major (C, B, K, L) real/imag planes
        K, L = self.K, self.L
        t = jnp.einsum('kx,bcxy->cbky', self.Vx_fwd, x)        # (C,B,2K,ny)
        g = jnp.einsum('cbky,ly->cbkl', t, self.Vy_stack)      # (C,B,2K,2L)
        XR = g[:, :, :K, :L] - g[:, :, K:, L:]
        XI = g[:, :, :K, L:] + g[:, :, K:, :L]
        return XR, XI

    def inverse(self, XR, XI):
        # XR/XI: (C, B, K, L) channel-major -> (B, C, nx, ny) real
        K, L, nx, ny = self.K, self.L, self.nx, self.ny
        xs = jnp.concatenate([XR, XI], axis=-1)                # (C,B,K,2L)
        u = jnp.einsum('kx,cbkl->cbxl', self.Vx_inv, xs)       # (C,B,2nx,2L)
        uR = u[:, :, :nx, :L] + u[:, :, nx:, L:]
        uI = u[:, :, :nx, L:] - u[:, :, nx:, :L]
        us = jnp.concatenate([uR, uI], axis=-1)                # (C,B,nx,2L)
        out = jnp.einsum('cbxl,ly->bcxy', us, self.Vy_stack)
        return out / (nx * ny)


# ------------------------------ module wrapper -------------------------------

class SpectralConv2dPallas:
    def __init__(self, in_channels, out_channels, modes1, modes2, transformer, key):
        self.in_channels = in_channels
        self.out_channels = out_channels
        self.modes1 = modes1
        self.modes2 = modes2
        self.transformer = transformer
        scale = 1.0 / (in_channels * out_channels)
        k1, k2, k3, k4 = jax.random.split(key, 4)
        shape = (in_channels, out_channels, modes1, modes2)
        # torch.rand(..., dtype=torch.cfloat): real & imag each ~ U[0, 1)
        self.w1_r = scale * jax.random.uniform(k1, shape, dtype=jnp.float32)
        self.w1_i = scale * jax.random.uniform(k2, shape, dtype=jnp.float32)
        self.w2_r = scale * jax.random.uniform(k3, shape, dtype=jnp.float32)
        self.w2_i = scale * jax.random.uniform(k4, shape, dtype=jnp.float32)
        # Fused weights over the (2*m1, m2) spectrum: rows [0:m1] use weights1,
        # rows [m1:2*m1] use weights2 (== out_ft[:, :, -m1:, :] in the reference).
        self.wr = jnp.concatenate([self.w1_r, self.w2_r], axis=2)   # (Ci,Co,2*m1,m2)
        self.wi = jnp.concatenate([self.w1_i, self.w2_i], axis=2)

    def __call__(self, x):
        # x: (B, Ci, Nx, Ny) real (NCHW, like PyTorch)
        xr_ft, xi_ft = self.transformer.forward(x)           # (Ci, B, 2*m1, m2)
        or_ft, oi_ft = spectral_mul_pallas(xr_ft, xi_ft, self.wr, self.wi)
        return self.transformer.inverse(or_ft, oi_ft)        # (B, Co, Nx, Ny)


# ----------------------------------- main ------------------------------------

if __name__ == "__main__":
    B, Ci, Co = 2, 4, 4
    Nx, Ny = 16, 16
    m1, m2 = 4, 4

    key = jax.random.PRNGKey(0)
    kx, kw = jax.random.split(key)
    x = jax.random.normal(kx, (B, Ci, Nx, Ny), dtype=jnp.float32)

    transformer = VandermondeTransform2D(Nx, Ny, m1, m2)
    layer = SpectralConv2dPallas(Ci, Co, m1, m2, transformer, kw)

    fwd = jax.jit(layer.__call__)
    out = jax.block_until_ready(fwd(x))
    assert out.shape == (B, Co, Nx, Ny)

    # correctness check against a pure-JAX complex reference of the module math
    Vx = transformer.VxR + 1j * transformer.VxI          # (2*m1, Nx)
    Vy = transformer.VyR + 1j * transformer.VyI          # (m2, Ny)
    x_ft = jnp.einsum('kx,bcxy,ly->bckl', Vx, x.astype(jnp.complex64), Vy)
    w1 = layer.w1_r + 1j * layer.w1_i
    w2 = layer.w2_r + 1j * layer.w2_i
    out_ft_ref = jnp.concatenate(
        [jnp.einsum('bixy,ioxy->boxy', x_ft[:, :, :m1, :], w1),
         jnp.einsum('bixy,ioxy->boxy', x_ft[:, :, -m1:, :], w2)], axis=2)
    ref = jnp.real(jnp.einsum('kx,bckl,ly->bcxy', jnp.conj(Vx),
                              out_ft_ref, jnp.conj(Vy))) / (Nx * Ny)
    err = float(jnp.max(jnp.abs(out - ref)))
    assert jnp.allclose(out, ref, atol=2e-4, rtol=2e-4), err

    print("KERNEL_OK")
</pallas_src>

<mosaic_0001>
module attributes {stable_mosaic.version = 11 : i64} {
  func.func @_spectral_mul_kernel(%arg0: i32, %arg1: i32, %arg2: memref<4x1x8x128xf32, #tpu.memory_space<vmem>>, %arg3: memref<4x1x8x128xf32, #tpu.memory_space<vmem>>, %arg4: memref<4x4x8x128xf32, #tpu.memory_space<vmem>>, %arg5: memref<4x4x8x128xf32, #tpu.memory_space<vmem>>, %arg6: memref<4x1x8x128xf32, #tpu.memory_space<vmem>>, %arg7: memref<4x1x8x128xf32, #tpu.memory_space<vmem>>) attributes {dimension_semantics = [#tpu.dimension_semantics<parallel>, #tpu.dimension_semantics<parallel>], iteration_bounds = array<i64: 1, 2>, scalar_prefetch = 0 : i64, scratch_operands = 0 : i64, tpu.core_type = #tpu.core_type<tc>, window_params = [{transform_indices = @transform_0, window_bounds = array<i64: 4, 1, 8, 128>}, {transform_indices = @transform_1, window_bounds = array<i64: 4, 1, 8, 128>}, {transform_indices = @transform_2, window_bounds = array<i64: 4, 4, 8, 128>}, {transform_indices = @transform_3, window_bounds = array<i64: 4, 4, 8, 128>}, {transform_indices = @transform_4, window_bounds = array<i64: 4, 1, 8, 128>}, {transform_indices = @transform_5, window_bounds = array<i64: 4, 1, 8, 128>}]} {
    %c0_i32 = arith.constant 0 : i32
    %c4_i32 = arith.constant 4 : i32
    %0 = arith.addi %c0_i32, %c4_i32 : i32
    %c1_i32 = arith.constant 1 : i32
    scf.for %arg8 = %c0_i32 to %0 step %c1_i32  : i32 {
      %c1_i32_1 = arith.constant 1 : i32
      %1 = arith.muli %arg8, %c1_i32_1 : i32
      %c0_i32_2 = arith.constant 0 : i32
      %2 = arith.addi %c0_i32_2, %1 : i32
      %cst = arith.constant 0.000000e+00 : f32
      %3 = vector.broadcast %cst : f32 to vector<1x8x128xf32>
      %c0_i32_3 = arith.constant 0 : i32
      %4 = arith.index_cast %c0_i32_3 : i32 to index
      %c0 = arith.constant 0 : index
      %c0_4 = arith.constant 0 : index
      %c0_5 = arith.constant 0 : index
      %5 = vector.load %arg2[%4, %c0, %c0_4, %c0_5] : memref<4x1x8x128xf32, #tpu.memory_space<vmem>>, vector<1x1x8x128xf32>
      %6 = vector.shape_cast %5 : vector<1x1x8x128xf32> to vector<1x8x128xf32>
      %7 = arith.index_cast %c0_i32_3 : i32 to index
      %c0_6 = arith.constant 0 : index
      %c0_7 = arith.constant 0 : index
      %c0_8 = arith.constant 0 : index
      %8 = vector.load %arg3[%7, %c0_6, %c0_7, %c0_8] : memref<4x1x8x128xf32, #tpu.memory_space<vmem>>, vector<1x1x8x128xf32>
      %9 = vector.shape_cast %8 : vector<1x1x8x128xf32> to vector<1x8x128xf32>
      %10 = arith.index_cast %c0_i32_3 : i32 to index
      %11 = arith.index_cast %2 : i32 to index
      %c0_9 = arith.constant 0 : index
      %c0_10 = arith.constant 0 : index
      %12 = vector.load %arg4[%10, %11, %c0_9, %c0_10] : memref<4x4x8x128xf32, #tpu.memory_space<vmem>>, vector<1x1x8x128xf32>
      %13 = vector.shape_cast %12 : vector<1x1x8x128xf32> to vector<8x128xf32>
      %14 = arith.index_cast %c0_i32_3 : i32 to index
      %15 = arith.index_cast %2 : i32 to index
      %c0_11 = arith.constant 0 : index
      %c0_12 = arith.constant 0 : index
      %16 = vector.load %arg5[%14, %15, %c0_11, %c0_12] : memref<4x4x8x128xf32, #tpu.memory_space<vmem>>, vector<1x1x8x128xf32>
      %17 = vector.shape_cast %16 : vector<1x1x8x128xf32> to vector<8x128xf32>
      %18 = vector.shape_cast %13 : vector<8x128xf32> to vector<1x8x128xf32>
      %19 = arith.mulf %6, %18 : vector<1x8x128xf32>
      %20 = vector.shape_cast %17 : vector<8x128xf32> to vector<1x8x128xf32>
      %21 = arith.mulf %9, %20 : vector<1x8x128xf32>
      %22 = arith.subf %19, %21 : vector<1x8x128xf32>
      %23 = arith.addf %3, %22 : vector<1x8x128xf32>
      %24 = vector.shape_cast %17 : vector<8x128xf32> to vector<1x8x128xf32>
      %25 = arith.mulf %6, %24 : vector<1x8x128xf32>
      %26 = vector.shape_cast %13 : vector<8x128xf32> to vector<1x8x128xf32>
      %27 = arith.mulf %9, %26 : vector<1x8x128xf32>
      %28 = arith.addf %25, %27 : vector<1x8x128xf32>
      %29 = arith.addf %3, %28 : vector<1x8x128xf32>
      %c1_i32_13 = arith.constant 1 : i32
      %30 = arith.index_cast %c1_i32_13 : i32 to index
      %c0_14 = arith.constant 0 : index
      %c0_15 = arith.constant 0 : index
      %c0_16 = arith.constant 0 : index
      %31 = vector.load %arg2[%30, %c0_14, %c0_15, %c0_16] : memref<4x1x8x128xf32, #tpu.memory_space<vmem>>, vector<1x1x8x128xf32>
      %32 = vector.shape_cast %31 : vector<1x1x8x128xf32> to vector<1x8x128xf32>
      %33 = arith.index_cast %c1_i32_13 : i32 to index
      %c0_17 = arith.constant 0 : index
      %c0_18 = arith.constant 0 : index
      %c0_19 = arith.constant 0 : index
      %34 = vector.load %arg3[%33, %c0_17, %c0_18, %c0_19] : memref<4x1x8x128xf32, #tpu.memory_space<vmem>>, vector<1x1x8x128xf32>
      %35 = vector.shape_cast %34 : vector<1x1x8x128xf32> to vector<1x8x128xf32>
      %36 = arith.index_cast %c1_i32_13 : i32 to index
      %37 = arith.index_cast %2 : i32 to index
      %c0_20 = arith.constant 0 : index
      %c0_21 = arith.constant 0 : index
      %38 = vector.load %arg4[%36, %37, %c0_20, %c0_21] : memref<4x4x8x128xf32, #tpu.memory_space<vmem>>, vector<1x1x8x128xf32>
      %39 = vector.shape_cast %38 : vector<1x1x8x128xf32> to vector<8x128xf32>
      %40 = arith.index_cast %c1_i32_13 : i32 to index
      %41 = arith.index_cast %2 : i32 to index
      %c0_22 = arith.constant 0 : index
      %c0_23 = arith.constant 0 : index
      %42 = vector.load %arg5[%40, %41, %c0_22, %c0_23] : memref<4x4x8x128xf32, #tpu.memory_space<vmem>>, vector<1x1x8x128xf32>
      %43 = vector.shape_cast %42 : vector<1x1x8x128xf32> to vector<8x128xf32>
      %44 = vector.shape_cast %39 : vector<8x128xf32> to vector<1x8x128xf32>
      %45 = arith.mulf %32, %44 : vector<1x8x128xf32>
      %46 = vector.shape_cast %43 : vector<8x128xf32> to vector<1x8x128xf32>
      %47 = arith.mulf %35, %46 : vector<1x8x128xf32>
      %48 = arith.subf %45, %47 : vector<1x8x128xf32>
      %49 = arith.addf %23, %48 : vector<1x8x128xf32>
      %50 = vector.shape_cast %43 : vector<8x128xf32> to vector<1x8x128xf32>
      %51 = arith.mulf %32, %50 : vector<1x8x128xf32>
      %52 = vector.shape_cast %39 : vector<8x128xf32> to vector<1x8x128xf32>
      %53 = arith.mulf %35, %52 : vector<1x8x128xf32>
      %54 = arith.addf %51, %53 : vector<1x8x128xf32>
      %55 = arith.addf %29, %54 : vector<1x8x128xf32>
      %c2_i32 = arith.constant 2 : i32
      %56 = arith.index_cast %c2_i32 : i32 to index
      %c0_24 = arith.constant 0 : index
      %c0_25 = arith.constant 0 : index
      %c0_26 = arith.constant 0 : index
      %57 = vector.load %arg2[%56, %c0_24, %c0_25, %c0_26] : memref<4x1x8x128xf32, #tpu.memory_space<vmem>>, vector<1x1x8x128xf32>
      %58 = vector.shape_cast %57 : vector<1x1x8x128xf32> to vector<1x8x128xf32>
      %59 = arith.index_cast %c2_i32 : i32 to index
      %c0_27 = arith.constant 0 : index
      %c0_28 = arith.constant 0 : index
      %c0_29 = arith.constant 0 : index
      %60 = vector.load %arg3[%59, %c0_27, %c0_28, %c0_29] : memref<4x1x8x128xf32, #tpu.memory_space<vmem>>, vector<1x1x8x128xf32>
      %61 = vector.shape_cast %60 : vector<1x1x8x128xf32> to vector<1x8x128xf32>
      %62 = arith.index_cast %c2_i32 : i32 to index
      %63 = arith.index_cast %2 : i32 to index
      %c0_30 = arith.constant 0 : index
      %c0_31 = arith.constant 0 : index
      %64 = vector.load %arg4[%62, %63, %c0_30, %c0_31] : memref<4x4x8x128xf32, #tpu.memory_space<vmem>>, vector<1x1x8x128xf32>
      %65 = vector.shape_cast %64 : vector<1x1x8x128xf32> to vector<8x128xf32>
      %66 = arith.index_cast %c2_i32 : i32 to index
      %67 = arith.index_cast %2 : i32 to index
      %c0_32 = arith.constant 0 : index
      %c0_33 = arith.constant 0 : index
      %68 = vector.load %arg5[%66, %67, %c0_32, %c0_33] : memref<4x4x8x128xf32, #tpu.memory_space<vmem>>, vector<1x1x8x128xf32>
      %69 = vector.shape_cast %68 : vector<1x1x8x128xf32> to vector<8x128xf32>
      %70 = vector.shape_cast %65 : vector<8x128xf32> to vector<1x8x128xf32>
      %71 = arith.mulf %58, %70 : vector<1x8x128xf32>
      %72 = vector.shape_cast %69 : vector<8x128xf32> to vector<1x8x128xf32>
      %73 = arith.mulf %61, %72 : vector<1x8x128xf32>
      %74 = arith.subf %71, %73 : vector<1x8x128xf32>
      %75 = arith.addf %49, %74 : vector<1x8x128xf32>
      %76 = vector.shape_cast %69 : vector<8x128xf32> to vector<1x8x128xf32>
      %77 = arith.mulf %58, %76 : vector<1x8x128xf32>
      %78 = vector.shape_cast %65 : vector<8x128xf32> to vector<1x8x128xf32>
      %79 = arith.mulf %61, %78 : vector<1x8x128xf32>
      %80 = arith.addf %77, %79 : vector<1x8x128xf32>
      %81 = arith.addf %55, %80 : vector<1x8x128xf32>
      %c3_i32 = arith.constant 3 : i32
      %82 = arith.index_cast %c3_i32 : i32 to index
      %c0_34 = arith.constant 0 : index
      %c0_35 = arith.constant 0 : index
      %c0_36 = arith.constant 0 : index
      %83 = vector.load %arg2[%82, %c0_34, %c0_35, %c0_36] : memref<4x1x8x128xf32, #tpu.memory_space<vmem>>, vector<1x1x8x128xf32>
      %84 = vector.shape_cast %83 : vector<1x1x8x128xf32> to vector<1x8x128xf32>
      %85 = arith.index_cast %c3_i32 : i32 to index
      %c0_37 = arith.constant 0 : index
      %c0_38 = arith.constant 0 : index
      %c0_39 = arith.constant 0 : index
      %86 = vector.load %arg3[%85, %c0_37, %c0_38, %c0_39] : memref<4x1x8x128xf32, #tpu.memory_space<vmem>>, vector<1x1x8x128xf32>
      %87 = vector.shape_cast %86 : vector<1x1x8x128xf32> to vector<1x8x128xf32>
      %88 = arith.index_cast %c3_i32 : i32 to index
      %89 = arith.index_cast %2 : i32 to index
      %c0_40 = arith.constant 0 : index
      %c0_41 = arith.constant 0 : index
      %90 = vector.load %arg4[%88, %89, %c0_40, %c0_41] : memref<4x4x8x128xf32, #tpu.memory_space<vmem>>, vector<1x1x8x128xf32>
      %91 = vector.shape_cast %90 : vector<1x1x8x128xf32> to vector<8x128xf32>
      %92 = arith.index_cast %c3_i32 : i32 to index
      %93 = arith.index_cast %2 : i32 to index
      %c0_42 = arith.constant 0 : index
      %c0_43 = arith.constant 0 : index
      %94 = vector.load %arg5[%92, %93, %c0_42, %c0_43] : memref<4x4x8x128xf32, #tpu.memory_space<vmem>>, vector<1x1x8x128xf32>
      %95 = vector.shape_cast %94 : vector<1x1x8x128xf32> to vector<8x128xf32>
      %96 = vector.shape_cast %91 : vector<8x128xf32> to vector<1x8x128xf32>
      %97 = arith.mulf %84, %96 : vector<1x8x128xf32>
      %98 = vector.shape_cast %95 : vector<8x128xf32> to vector<1x8x128xf32>
      %99 = arith.mulf %87, %98 : vector<1x8x128xf32>
      %100 = arith.subf %97, %99 : vector<1x8x128xf32>
      %101 = arith.addf %75, %100 : vector<1x8x128xf32>
      %102 = vector.shape_cast %95 : vector<8x128xf32> to vector<1x8x128xf32>
      %103 = arith.mulf %84, %102 : vector<1x8x128xf32>
      %104 = vector.shape_cast %91 : vector<8x128xf32> to vector<1x8x128xf32>
      %105 = arith.mulf %87, %104 : vector<1x8x128xf32>
      %106 = arith.addf %103, %105 : vector<1x8x128xf32>
      %107 = arith.addf %81, %106 : vector<1x8x128xf32>
      %c4_i32_44 = arith.constant 4 : i32
      %108 = arith.index_cast %2 : i32 to index
      %c0_45 = arith.constant 0 : index
      %c0_46 = arith.constant 0 : index
      %c0_47 = arith.constant 0 : index
      %109 = vector.load %arg6[%108, %c0_45, %c0_46, %c0_47] : memref<4x1x8x128xf32, #tpu.memory_space<vmem>>, vector<1x1x8x128xf32>
      %110 = vector.shape_cast %109 : vector<1x1x8x128xf32> to vector<1x8x128xf32>
      %111 = vector.shape_cast %101 : vector<1x8x128xf32> to vector<1x1x8x128xf32>
      tpu.vector_store %arg6[%108, %c0_45, %c0_46, %c0_47], %111 {strides = array<i32>} : memref<4x1x8x128xf32, #tpu.memory_space<vmem>>, vector<1x1x8x128xf32>,
      %112 = arith.index_cast %2 : i32 to index
      %c0_48 = arith.constant 0 : index
      %c0_49 = arith.constant 0 : index
      %c0_50 = arith.constant 0 : index
      %113 = vector.load %arg7[%112, %c0_48, %c0_49, %c0_50] : memref<4x1x8x128xf32, #tpu.memory_space<vmem>>, vector<1x1x8x128xf32>
      %114 = vector.shape_cast %113 : vector<1x1x8x128xf32> to vector<1x8x128xf32>
      %115 = vector.shape_cast %107 : vector<1x8x128xf32> to vector<1x1x8x128xf32>
      tpu.vector_store %arg7[%112, %c0_48, %c0_49, %c0_50], %115 {strides = array<i32>} : memref<4x1x8x128xf32, #tpu.memory_space<vmem>>, vector<1x1x8x128xf32>,
    }
    %c4_i32_0 = arith.constant 4 : i32
    return
  }
  func.func @transform_0(%arg0: i32, %arg1: i32) -> (i32, i32, i32, i32) {
    %c0_i32 = arith.constant 0 : i32
    %c0_i32_0 = arith.constant 0 : i32
    %c0_i32_1 = arith.constant 0 : i32
    return %c0_i32, %arg1, %arg0, %c0_i32_0 : i32, i32, i32, i32
  }
  func.func @transform_1(%arg0: i32, %arg1: i32) -> (i32, i32, i32, i32) {
    %c0_i32 = arith.constant 0 : i32
    %c0_i32_0 = arith.constant 0 : i32
    %c0_i32_1 = arith.constant 0 : i32
    return %c0_i32, %arg1, %arg0, %c0_i32_0 : i32, i32, i32, i32
  }
  func.func @transform_2(%arg0: i32, %arg1: i32) -> (i32, i32, i32, i32) {
    %c0_i32 = arith.constant 0 : i32
    %c0_i32_0 = arith.constant 0 : i32
    %c0_i32_1 = arith.constant 0 : i32
    %c0_i32_2 = arith.constant 0 : i32
    return %c0_i32, %c0_i32_0, %arg0, %c0_i32_1 : i32, i32, i32, i32
  }
  func.func @transform_3(%arg0: i32, %arg1: i32) -> (i32, i32, i32, i32) {
    %c0_i32 = arith.constant 0 : i32
    %c0_i32_0 = arith.constant 0 : i32
    %c0_i32_1 = arith.constant 0 : i32
    %c0_i32_2 = arith.constant 0 : i32
    return %c0_i32, %c0_i32_0, %arg0, %c0_i32_1 : i32, i32, i32, i32
  }
  func.func @transform_4(%arg0: i32, %arg1: i32) -> (i32, i32, i32, i32) {
    %c0_i32 = arith.constant 0 : i32
    %c0_i32_0 = arith.constant 0 : i32
    %c0_i32_1 = arith.constant 0 : i32
    return %c0_i32, %arg1, %arg0, %c0_i32_0 : i32, i32, i32, i32
  }
  func.func @transform_5(%arg0: i32, %arg1: i32) -> (i32, i32, i32, i32) {
    %c0_i32 = arith.constant 0 : i32
    %c0_i32_0 = arith.constant 0 : i32
    %c0_i32_1 = arith.constant 0 : i32
    return %c0_i32, %arg1, %arg0, %c0_i32_0 : i32, i32, i32, i32
  }
}

</mosaic_0001>

<bundles_post_ra>
// kernel: a_call__.1
= control target key start
LH: loop header
LB: loop body
LE: loop exit
PB: predicated region body
PF: predicated region fallthrough
CT: control target
= control target key end

     0   :  { %s920_s18 = smov 0   ;;  %s922_s19 = smov 0   ;;  %s1058_s0 = inlined_call_operand.vmem [shape: f32[4,2,8,128], index: 0, kind: input, shape index: {}]   ;;  %s1059_s1 = inlined_call_operand.vmem [shape: f32[4,2,8,128], index: 1, kind: input, shape index: {}]   ;;  %s1060_s2 = inlined_call_operand.vmem [shape: f32[4,4,8,128], index: 2, kind: input, shape index: {}]   ;;  %s1061_s3 = inlined_call_operand.vmem [shape: f32[4,4,8,128], index: 3, kind: input, shape index: {}]   ;;  %s1062_s4 = inlined_call_operand.vmem [shape: f32[4,2,8,128], index: 4, kind: output, shape index: {0}]   ;;  %s1063_s5 = inlined_call_operand.vmem [shape: f32[4,2,8,128], index: 5, kind: output, shape index: {1}]  }
   0x1   :  { %s924_s20 = smov 0   ;;  %s926_s21 = smov 0  }
   0x2   :  { %s928_s22 = smov 0  }
   0x3 LB: > { %s25_s23 = sadd.s32 1, %s880_s21  ;;  %s754_s24 = sadd.s32 4294967295, %s884_s22   ;;  %s884_s22 = sphi %s928_s22, %s16_s22   ;;  %s880_s21 = sphi %s926_s21, %s1069_s21   ;;  %s876_s20 = sphi %s924_s20, %s1068_s20   ;;  %s872_s19 = sphi %s922_s19, %s1067_s19   ;;  %s868_s18 = sphi %s920_s18, %s1066_s18  }
   0x4   : > { %p26_p0 = scmp.ge.s32.totalorder %s25_s23, 2  ;;  %p44_p1 = scmp.ne.s32.totalorder %s872_s19, %s868_s18 }
   0x5   : > { %p45_p2 = scmp.eq.s32.totalorder %s884_s22, 0  ;;  %p156_p4 = scmp.eq.s32.totalorder %s754_s24, 1 }
   0x6   : > { %s1071_s23 = smov (%p26_p0, %s25_s23), 0  ;;  %s37_s27 = sadd.s32 1, %s872_s19 }
   0x7   : > { %p952_p3 = por %p45_p2, %p44_p1  ;;  %s32_s26 = ssub.s32 %s880_s21, %s1071_s23 }
   0x8   : > { %p35_p5 = scmp.eq.s32.totalorder %s32_s26, 0  ;;  %p959_p6 = por %p156_p4, %p44_p1 }
   0x9   : > { %p759_p7 = scmp.ge.s32.totalorder %s884_s22, 2 }
   0xa   : > { %s964_s29 = scalar_select %p35_p5, %s872_s19, %s37_s27  }
   0xb   : > { %220 = sbr.rel (%p759_p7) target bundleno = 32 (0x20), region = 24 }
  0x12   : > { %223 = sbr.rel (!%p952_p3) target bundleno = 25 (0x19), region = 28  ;;  %s225_s30 = sand.u32 (%p952_p3), 1, %s872_s19  }
  0x13   : > { %s761_s6 = sshll.u32 (%p952_p3), %s880_s21, 3  ;;  %s760_s7 = sshll.u32 (%p952_p3), %s225_s30, 5 }
  0x14   : > { %s230_s10 = scalar_lea.vmem (%p952_p3), %s1058_s0, %s761_s6  ;;  %s227_s11 = scalar_lea.vmem (%p952_p3), [#allocation2], %s760_s7 }
  0x15   : > { %v264_v0 = vld [vmem:[%s230_s10] sm:$0xff] (%p952_p3)  ;;  %v266_v1 = vld [vmem:[%s230_s10 + $0x10] sm:$0xff] (%p952_p3) }
  0x16   : > { %v268_v2 = vld [vmem:[%s230_s10 + $0x20] sm:$0xff] (%p952_p3)  ;;  %265 = vst [vmem:[%s227_s11] sm:$0xff] (%p952_p3), %v264_v0  ;;  %267 = vst [vmem:[%s227_s11 + $0x8] sm:$0xff] (%p952_p3), %v266_v1  ;;  %v270_v3 = vld [vmem:[%s230_s10 + $0x30] sm:$0xff] (%p952_p3) }
  0x17   : > { %269 = vst [vmem:[%s227_s11 + $0x10] sm:$0xff] (%p952_p3), %v268_v2  ;;  %271 = vst [vmem:[%s227_s11 + $0x18] sm:$0xff] (%p952_p3), %v270_v3 }
  0x19 PF: > { %277 = sbr.rel (!%p952_p3) target bundleno = 32 (0x20), region = 66  ;;  %s279_s12 = sand.u32 (%p952_p3), 1, %s872_s19  }
  0x1a   : > { %s763_s13 = sshll.u32 (%p952_p3), %s880_s21, 3  ;;  %s762_s14 = sshll.u32 (%p952_p3), %s279_s12, 5 }
  0x1b   : > { %s284_s17 = scalar_lea.vmem (%p952_p3), %s1059_s1, %s763_s13  ;;  %s281_s24 = scalar_lea.vmem (%p952_p3), [#allocation3], %s762_s14 }
  0x1c   : > { %v318_v4 = vld [vmem:[%s284_s17] sm:$0xff] (%p952_p3)  ;;  %v320_v5 = vld [vmem:[%s284_s17 + $0x10] sm:$0xff] (%p952_p3) }
  0x1d   : > { %v322_v6 = vld [vmem:[%s284_s17 + $0x20] sm:$0xff] (%p952_p3)  ;;  %319 = vst [vmem:[%s281_s24] sm:$0xff] (%p952_p3), %v318_v4  ;;  %321 = vst [vmem:[%s281_s24 + $0x8] sm:$0xff] (%p952_p3), %v320_v5  ;;  %v324_v7 = vld [vmem:[%s284_s17 + $0x30] sm:$0xff] (%p952_p3) }
  0x1e   : > { %323 = vst [vmem:[%s281_s24 + $0x10] sm:$0xff] (%p952_p3), %v322_v6  ;;  %325 = vst [vmem:[%s281_s24 + $0x18] sm:$0xff] (%p952_p3), %v324_v7 }
  0x20 PF: > { %p764_p8 = scmp.ge.s32.totalorder %s884_s22, 1  ;;  %p330_p9 = scmp.lt.s32.totalorder %s884_s22, 3 }
  0x22   : > { %p331_p10 = pnand %p764_p8, %p330_p9 }
  0x23   : > { %s337_s25 = sand.u32 (!%p331_p10), 1, %s868_s18   ;;  %s992_s8 = smov (!%p331_p10), 0  }
  0x24   : > { %334 = sbr.rel (%p331_p10) target bundleno = 76 (0x4c), region = 104  ;;  %s765_s26 = sshll.u32 (!%p331_p10), %s337_s25, 5 }
  0x25   : > { %s984_s27 = scalar_lea.vmem (!%p331_p10), [#allocation2], %s765_s26  ;;  %s986_s30 = scalar_lea.vmem (!%p331_p10), [#allocation3], %s765_s26 }
  0x26   : > { %s988_s6 = scalar_lea.vmem (!%p331_p10), [#allocation4], %s765_s26  ;;  %s990_s7 = scalar_lea.vmem (!%p331_p10), [#allocation5], %s765_s26 }
  0x2b LB: >> { %v400_v8 = vld [vmem:[%s984_s27] sm:$0xff]  ;;  %s1000_s18 = sshll.u32 %s888_s8, 3  ;;  %v770_v10 = vld [vmem:[%s984_s27 + $0x8] sm:$0xff]  ;;  %v776_v12 = vld [vmem:[%s984_s27 + $0x10] sm:$0xff]  ;;  %s399_s8 = sadd.s32 1, %s888_s8   ;;  %s888_s8 = sphi %s992_s8, %s399_s8  }
  0x2c   : >> { %v401_v9 = vld [vmem:[%s986_s30] sm:$0xff]  ;;  %v771_v11 = vld [vmem:[%s986_s30 + $0x8] sm:$0xff]  ;;  %s403_s11 = scalar_lea.vmem %s1060_s2, %s1000_s18  ;;  %s405_s14 = scalar_lea.vmem %s1061_s3, %s1000_s18  ;;  %v777_v13 = vld [vmem:[%s986_s30 + $0x10] sm:$0xff] }
  0x2d   : >> { %v782_v14 = vld [vmem:[%s984_s27 + $0x18] sm:$0xff]  ;;  %v404_v16 = vld [vmem:[%s403_s11] sm:$0xff]  ;;  %s466_s15 = scalar_lea.vmem %s988_s6, %s1000_s18 [#allocation4]  ;;  %s468_s16 = scalar_lea.vmem %s990_s7, %s1000_s18 [#allocation5] }
  0x2e   : >> { %v783_v15 = vld [vmem:[%s986_s30 + $0x18] sm:$0xff]  ;;  %v406_v17 = vld [vmem:[%s405_s14] sm:$0xff]  ;;  %v407_v19 = vmul.f32 %v404_v16, %v400_v8  ;;  %v412_v31 = vmul.f32 %v404_v16, %v401_v9  ;;  %p396_p11 = scmp.ge.s32.totalorder %s399_s8, 4  }
  0x2f   : >> { %v773_v18 = vld [vmem:[%s403_s11 + $0x20] sm:$0xff]  ;;  %v408_v20 = vmul.f32 %v406_v17, %v401_v9  ;;  %v411_v25 = vmul.f32 %v406_v17, %v400_v8 }
  0x30   : >> { %v775_v21 = vld [vmem:[%s405_s14 + $0x20] sm:$0xff]  ;;  %v424_v22 = vmul.f32 %v773_v18, %v770_v10  ;;  %v429_v39 = vmul.f32 %v773_v18, %v771_v11 }
  0x31   : >> { %v779_v23 = vld [vmem:[%s403_s11 + $0x40] sm:$0xff]  ;;  %v425_v26 = vmul.f32 %v775_v21, %v771_v11  ;;  %v409_v32 = vsub.f32 %v407_v19, %v408_v20  ;;  %v428_v35 = vmul.f32 %v775_v21, %v770_v10  ;;  %v413_v38 = vadd.f32 %v412_v31, %v411_v25 }
  0x32   : >> { %v781_v24 = vld [vmem:[%s405_s14 + $0x40] sm:$0xff]  ;;  %v441_v27 = vmul.f32 %v779_v23, %v776_v12  ;;  %v446_v41 = vmul.f32 %v779_v23, %v777_v13 }
  0x33   : >> { %v442_v28 = vmul.f32 %v781_v24, %v777_v13  ;;  %v785_v29 = vld [vmem:[%s403_s11 + $0x60] sm:$0xff]  ;;  %v426_v36 = vsub.f32 %v424_v22, %v425_v26  ;;  %v445_v40 = vmul.f32 %v781_v24, %v776_v12  ;;  %v430_v45 = vadd.f32 %v429_v39, %v428_v35 }
  0x34   : >> { %v787_v30 = vld [vmem:[%s405_s14 + $0x60] sm:$0xff]  ;;  %v458_v33 = vmul.f32 %v785_v29, %v782_v14  ;;  %v463_v46 = vmul.f32 %v785_v29, %v783_v15 }
  0x35   : >> { %v459_v34 = vmul.f32 %v787_v30, %v783_v15  ;;  %v443_v37 = vsub.f32 %v441_v27, %v442_v28  ;;  %v462_v42 = vmul.f32 %v787_v30, %v782_v14  ;;  %v427_v43 = vadd.f32 %v426_v36, %v409_v32 }
  0x36   : >> { %v447_v47 = vadd.f32 %v446_v41, %v445_v40  ;;  %v431_v49 = vadd.f32 %v430_v45, %v413_v38  ;;  %398 = sbr.rel (!%p396_p11) target bundleno = 43 (0x2b), region = 272 }
  0x37   : >> { %v460_v44 = vsub.f32 %v458_v33, %v459_v34  ;;  %v444_v48 = vadd.f32 %v443_v37, %v427_v43  ;;  %v464_v50 = vadd.f32 %v463_v46, %v462_v42 }
  0x38   : >> { %v448_v52 = vadd.f32 %v447_v47, %v431_v49 }
  0x39   : >> { %v461_v51 = vadd.f32 %v460_v44, %v444_v48 }
  0x3a   : >> { %v465_v53 = vadd.f32 %v464_v50, %v448_v52 }
  0x3b   : >> { %467 = vst [vmem:[%s466_s15] sm:$0xff] %v461_v51 }
  0x3c   : >> { %469 = vst [vmem:[%s468_s16] sm:$0xff] %v465_v53 }
  0x3d   : > { %480 = sbr.rel (!%p959_p6) target bundleno = 69 (0x45), region = 123  ;;  %s790_s17 = sshll.u32 (%p959_p6), %s876_s20, 3 }
  0x3e   : > { %s483_s26 = scalar_lea.vmem (%p959_p6), %s1062_s4, %s790_s17 }
  0x42   : > { %v517_v54 = vld [vmem:[%s988_s6] sm:$0xff] (%p959_p6)  ;;  %v519_v55 = vld [vmem:[%s988_s6 + $0x8] sm:$0xff] (%p959_p6)  ;;  %v521_v56 = vld [vmem:[%s988_s6 + $0x10] sm:$0xff] (%p959_p6) }
  0x43   : > { %v523_v57 = vld [vmem:[%s988_s6 + $0x18] sm:$0xff] (%p959_p6)  ;;  %518 = vst [vmem:[%s483_s26] sm:$0xff] (%p959_p6), %v517_v54  ;;  %520 = vst [vmem:[%s483_s26 + $0x10] sm:$0xff] (%p959_p6), %v519_v55 }
  0x44   : > { %522 = vst [vmem:[%s483_s26 + $0x20] sm:$0xff] %v521_v56  ;;  %524 = vst [vmem:[%s483_s26 + $0x30] sm:$0xff] %v523_v57 }
  0x45 PF: > { %530 = sbr.rel (!%p959_p6) target bundleno = 76 (0x4c), region = 161  ;;  %s791_s27 = sshll.u32 (%p959_p6), %s876_s20, 3  ;;  %v567_v58 = vld [vmem:[%s990_s7] sm:$0xff] (%p959_p6)  ;;  %v569_v59 = vld [vmem:[%s990_s7 + $0x8] sm:$0xff] (%p959_p6)  ;;  %v571_v60 = vld [vmem:[%s990_s7 + $0x10] sm:$0xff] (%p959_p6) }
  0x46   : > { %s533_s6 = scalar_lea.vmem (%p959_p6), %s1063_s5, %s791_s27  ;;  %v573_v61 = vld [vmem:[%s990_s7 + $0x18] sm:$0xff] (%p959_p6) }
  0x47   : > { %568 = vst [vmem:[%s533_s6] sm:$0xff] (%p959_p6), %v567_v58  ;;  %570 = vst [vmem:[%s533_s6 + $0x10] sm:$0xff] (%p959_p6), %v569_v59 }
  0x48   : > { %572 = vst [vmem:[%s533_s6 + $0x20] sm:$0xff] (%p959_p6), %v571_v60  ;;  %574 = vst [vmem:[%s533_s6 + $0x30] sm:$0xff] (%p959_p6), %v573_v61 }
  0x4c PF: > { %s16_s22 = sadd.s32 1, %s884_s22   ;;  %s1066_s18 = smov %s872_s19 }
  0x4d   : > { %p13_p12 = scmp.ge.s32.totalorder %s16_s22, 4   ;;  %s1067_s19 = smov %s964_s29 }
  0x4e   : > { %s1068_s20 = smov %s880_s21  ;;  %s1069_s21 = smov %s1071_s23 }
  0x4f   :  { %15 = sbr.rel (!%p13_p12) target bundleno = 3 (0x3), region = 283 }

</bundles_post_ra>
